<compile_context>
chip_gen: v7x
topology: tpu7x:2x2x1
jax: 0.10.0
libtpu: 0.0.40
codegen_flags: <defaults>
</compile_context>

<pallas_src>
import jax
import jax.numpy as jnp
from jax.experimental import pallas as pl
from jax.experimental.pallas import tpu as pltpu


def _round_up(n, m):
    return ((n + m - 1) // m) * m


def _classifier_head_kernel(x_ref, w_ref, b_ref, o_ref, acc_ref):
    # Grid = (batch_tiles, d_chunks); the D reduction axis is last / "arbitrary".
    k = pl.program_id(1)

    @pl.when(k == 0)
    def _():
        acc_ref[...] = jnp.zeros_like(acc_ref)

    # Stream x in its native dtype; upcast in-register, accumulate in f32.
    x = x_ref[...].astype(jnp.float32)          # (TB, TK)
    w = w_ref[...].astype(jnp.float32)          # (1, TK), broadcasts over rows
    acc_ref[...] += jnp.sum(x * w, axis=-1, keepdims=True)   # VPU mul + lane reduce

    @pl.when(k == pl.num_programs(1) - 1)
    def _():
        z = acc_ref[...] + b_ref[0]
        # Exact, numerically-stable sigmoid: exp of a non-positive argument only
        # (no overflow), exact divide.  exp lands on the EUP; cost is ~1/D of the
        # streamed elements, nowhere near the HBM-bound critical path.
        e = jnp.exp(-jnp.abs(z))
        sig = jnp.where(z >= 0.0, 1.0 / (1.0 + e), e / (1.0 + e))
        o_ref[...] = sig.astype(o_ref.dtype)


def classifier_head(x, weight, bias, *, vmem_budget_bytes=20 * 1024 * 1024):
    """ClassifierHead forward: sigmoid(x @ weight.T + bias).squeeze(-1).

    x: (B, D) float array, weight: (1, D), bias: (1,). Returns (B,) in x.dtype.
    """
    B, D = x.shape
    assert weight.shape == (1, D) and bias.shape == (1,)
    weight = weight.astype(jnp.float32)           # params are tiny; keep in f32
    bias = bias.astype(jnp.float32)
    out_dtype = x.dtype

    itemsize = jnp.dtype(x.dtype).itemsize
    row_align = 8 if itemsize >= 4 else 16        # sublane packing for sub-32-bit dtypes

    # ---- D (reduction) chunking: bounds VMEM independently of D (matters most on
    # v7x's 64 MiB VMEM).  Only split when the split is exact so no garbage columns
    # can leak into valid rows' reductions.
    if D > 2048 and D % 128 == 0:
        TK = 2048
        while D % TK != 0:
            TK //= 2
    else:
        TK = D
    n_k = D // TK

    # ---- Batch tile from a VMEM byte budget.  Per row of a tile we hold the
    # double-buffered native-dtype x chunk plus the f32 upcast and x*w temporaries.
    bytes_per_row = 2 * TK * itemsize + 2 * TK * 4 + 16
    TB = max(row_align, (vmem_budget_bytes // bytes_per_row) // row_align * row_align)
    TB = min(TB, _round_up(B, row_align))

    # Megacore: keep >= 2 batch steps when the batch is big enough, so the "parallel"
    # axis can shard across the two v7x TensorCores (no-op on v5e/v6e).
    if (B + TB - 1) // TB == 1 and B > row_align and B * D * itemsize > (2 << 20):
        TB = max(row_align, _round_up((B + 1) // 2, row_align))

    n_b = (B + TB - 1) // TB                      # ragged last block; no jnp.pad of x
    grid = (n_b, n_k)

    # Raise the scoped VMEM limit to fit the chosen tiles (v5e default is only 16 MiB),
    # but stay well under v7x's 64 MiB physical VMEM.
    est = TB * bytes_per_row + 4 * TK * 4 + 4 * TB * (4 + itemsize)
    vmem_limit = int(min(32 * 1024 * 1024, max(est + (2 << 20), 4 << 20)))

    out = pl.pallas_call(
        _classifier_head_kernel,
        out_shape=jax.ShapeDtypeStruct((B, 1), out_dtype),
        grid=grid,
        in_specs=[
            pl.BlockSpec((TB, TK), lambda i, k: (i, k)),           # stream x tiles
            pl.BlockSpec((1, TK), lambda i, k: (0, k)),            # weight chunk (reused)
            pl.BlockSpec(memory_space=pltpu.MemorySpace.SMEM),     # bias scalar in SMEM
        ],
        out_specs=pl.BlockSpec((TB, 1), lambda i, k: (i, 0)),
        scratch_shapes=[pltpu.VMEM((TB, 1), jnp.float32)],         # f32 accumulator
        compiler_params=pltpu.CompilerParams(
            dimension_semantics=("parallel", "arbitrary"),
            vmem_limit_bytes=vmem_limit,
        ),
    )(x, weight, bias)

    return out[:, 0]                                               # squeeze(-1)


if __name__ == "__main__":
    key = jax.random.PRNGKey(0)
    k_x, k_w, k_b = jax.random.split(key, 3)

    batch, input_dim = 8, 32

    # nn.Linear-style init: U(-1/sqrt(D), 1/sqrt(D))
    bound = 1.0 / (input_dim ** 0.5)
    weight = jax.random.uniform(k_w, (1, input_dim), jnp.float32, -bound, bound)
    bias = jax.random.uniform(k_b, (1,), jnp.float32, -bound, bound)
    x = jax.random.normal(k_x, (batch, input_dim), jnp.float32)

    out = classifier_head(x, weight, bias)
    jax.block_until_ready(out)

    ref = jax.nn.sigmoid(x @ weight.T + bias)[:, 0]
    assert out.shape == (batch,), out.shape
    assert jnp.allclose(out, ref, atol=1e-5, rtol=1e-5), float(jnp.max(jnp.abs(out - ref)))

    print("KERNEL_OK")
</pallas_src>

<mosaic_0001>
module attributes {stable_mosaic.version = 11 : i64} {
  func.func @_classifier_head_kernel(%arg0: i32, %arg1: i32, %arg2: memref<8x32xf32, #tpu.memory_space<vmem>>, %arg3: memref<1x32xf32, #tpu.memory_space<vmem>>, %arg4: memref<1xf32, #tpu.memory_space<smem>>, %arg5: memref<8x1xf32, #tpu.memory_space<vmem>>, %arg6: memref<8x1xf32, #tpu.memory_space<vmem>>) attributes {dimension_semantics = [#tpu.dimension_semantics<parallel>, #tpu.dimension_semantics<arbitrary>], iteration_bounds = array<i64: 1, 1>, scalar_prefetch = 0 : i64, scratch_operands = 1 : i64, tpu.core_type = #tpu.core_type<tc>, window_params = [{transform_indices = @transform_0, window_bounds = array<i64: 8, 32>}, {transform_indices = @transform_1, window_bounds = array<i64: 1, 32>}, {transform_indices = @transform_2, window_bounds = array<i64: 1>}, {transform_indices = @transform_3, window_bounds = array<i64: 8, 1>}]} {
    %c0_i32 = arith.constant 0 : i32
    %0 = arith.cmpi eq, %arg1, %c0_i32 : i32
    %1 = arith.extui %0 : i1 to i32
    %c0_i32_0 = arith.constant 0 : i32
    %2 = arith.cmpi ne, %1, %c0_i32_0 : i32
    scf.if %2 {
      %cst_10 = arith.constant 0.000000e+00 : f32
      %15 = vector.broadcast %cst_10 : f32 to vector<8x1xf32>
      %c0_11 = arith.constant 0 : index
      %c0_12 = arith.constant 0 : index
      %16 = vector.load %arg6[%c0_11, %c0_12] : memref<8x1xf32, #tpu.memory_space<vmem>>, vector<8x1xf32>
      tpu.vector_store %arg6[%c0_11, %c0_12], %15 {strides = array<i32>} : memref<8x1xf32, #tpu.memory_space<vmem>>, vector<8x1xf32>,
    } else {
    }
    %c0 = arith.constant 0 : index
    %c0_1 = arith.constant 0 : index
    %3 = vector.load %arg2[%c0, %c0_1] : memref<8x32xf32, #tpu.memory_space<vmem>>, vector<8x32xf32>
    %c0_2 = arith.constant 0 : index
    %c0_3 = arith.constant 0 : index
    %4 = vector.load %arg3[%c0_2, %c0_3] : memref<1x32xf32, #tpu.memory_space<vmem>>, vector<1x32xf32>
    %c0_4 = arith.constant 0 : index
    %c0_5 = arith.constant 0 : index
    %5 = vector.load %arg6[%c0_4, %c0_5] : memref<8x1xf32, #tpu.memory_space<vmem>>, vector<8x1xf32>
    %6 = vector.broadcast %4 : vector<1x32xf32> to vector<8x32xf32>
    %7 = arith.mulf %3, %6 : vector<8x32xf32>
    %cst = arith.constant dense<0.000000e+00> : vector<8xf32>
    %8 = vector.multi_reduction <add>, %7, %cst [1] : vector<8x32xf32> to vector<8xf32>
    %9 = vector.shape_cast %8 : vector<8xf32> to vector<8x1xf32>
    %10 = arith.addf %5, %9 : vector<8x1xf32>
    %c0_6 = arith.constant 0 : index
    %c0_7 = arith.constant 0 : index
    %11 = vector.load %arg6[%c0_6, %c0_7] : memref<8x1xf32, #tpu.memory_space<vmem>>, vector<8x1xf32>
    tpu.vector_store %arg6[%c0_6, %c0_7], %10 {strides = array<i32>} : memref<8x1xf32, #tpu.memory_space<vmem>>, vector<8x1xf32>,
    %c0_i32_8 = arith.constant 0 : i32
    %12 = arith.cmpi eq, %arg1, %c0_i32_8 : i32
    %13 = arith.extui %12 : i1 to i32
    %c0_i32_9 = arith.constant 0 : i32
    %14 = arith.cmpi ne, %13, %c0_i32_9 : i32
    scf.if %14 {
      %c0_10 = arith.constant 0 : index
      %c0_11 = arith.constant 0 : index
      %15 = vector.load %arg6[%c0_10, %c0_11] : memref<8x1xf32, #tpu.memory_space<vmem>>, vector<8x1xf32>
      %c0_12 = arith.constant 0 : index
      %16 = memref.load %arg4[%c0_12] : memref<1xf32, #tpu.memory_space<smem>>
      %17 = vector.broadcast %16 : f32 to vector<8x1xf32>
      %18 = arith.addf %15, %17 : vector<8x1xf32>
      %19 = math.absf %18 : vector<8x1xf32>
      %cst_13 = arith.constant 0.000000e+00 : f32
      %20 = vector.broadcast %cst_13 : f32 to vector<8x1xf32>
      %21 = arith.subf %20, %19 : vector<8x1xf32>
      %22 = math.exp %21 : vector<8x1xf32>
      %cst_14 = arith.constant 0.000000e+00 : f32
      %23 = vector.broadcast %cst_14 : f32 to vector<8x1xf32>
      %24 = arith.cmpf oge, %18, %23 : vector<8x1xf32>
      %cst_15 = arith.constant 1.000000e+00 : f32
      %25 = vector.broadcast %cst_15 : f32 to vector<8x1xf32>
      %26 = arith.addf %25, %22 : vector<8x1xf32>
      %cst_16 = arith.constant 1.000000e+00 : f32
      %27 = vector.broadcast %cst_16 : f32 to vector<8x1xf32>
      %28 = arith.divf %27, %26 : vector<8x1xf32>
      %cst_17 = arith.constant 1.000000e+00 : f32
      %29 = vector.broadcast %cst_17 : f32 to vector<8x1xf32>
      %30 = arith.addf %29, %22 : vector<8x1xf32>
      %31 = arith.divf %22, %30 : vector<8x1xf32>
      %32 = arith.select %24, %28, %31 : vector<8x1xi1>, vector<8x1xf32>
      %c0_18 = arith.constant 0 : index
      %c0_19 = arith.constant 0 : index
      %33 = vector.load %arg5[%c0_18, %c0_19] : memref<8x1xf32, #tpu.memory_space<vmem>>, vector<8x1xf32>
      tpu.vector_store %arg5[%c0_18, %c0_19], %32 {strides = array<i32>} : memref<8x1xf32, #tpu.memory_space<vmem>>, vector<8x1xf32>,
    } else {
    }
    return
  }
  func.func @transform_0(%arg0: i32, %arg1: i32) -> (i32, i32) {
    %c0_i32 = arith.constant 0 : i32
    return %arg0, %arg1 : i32, i32
  }
  func.func @transform_1(%arg0: i32, %arg1: i32) -> (i32, i32) {
    %c0_i32 = arith.constant 0 : i32
    %c0_i32_0 = arith.constant 0 : i32
    return %c0_i32, %arg1 : i32, i32
  }
  func.func @transform_2(%arg0: i32, %arg1: i32) -> i32 {
    %c0_i32 = arith.constant 0 : i32
    %c0_i32_0 = arith.constant 0 : i32
    return %c0_i32 : i32
  }
  func.func @transform_3(%arg0: i32, %arg1: i32) -> (i32, i32) {
    %c0_i32 = arith.constant 0 : i32
    %c0_i32_0 = arith.constant 0 : i32
    return %arg0, %c0_i32 : i32, i32
  }
}

</mosaic_0001>

<bundles_post_ra>
// kernel: tpu_custom_call.1
= control target key start
LH: loop header
LB: loop body
LE: loop exit
PB: predicated region body
PF: predicated region fallthrough
CT: control target
= control target key end

     0   :  { %9 = vsyncpa [#allocation5], 0  ;;  %s104_s12 = smov [#allocation4]   ;;  %s150_s0 = inlined_call_operand.hbm [shape: f32[8,32], index: 0, kind: input, shape index: {}]   ;;  %s151_s1 = inlined_call_operand.vmem [shape: f32[1,32], index: 1, kind: input, shape index: {}]   ;;  %s152_s2 = inlined_call_operand.<no memory space> [shape: f32[1], index: 2, kind: input, shape index: {}]   ;;  %s153_s3 = inlined_call_operand.vmem [shape: f32[8,1], index: 3, kind: output, shape index: {}]  }
   0x1   :  { %s16_s13 = sshll.u32 %s104_s12, 4  ;;  %s80_s16 = scalar_lea.hbm %s150_s0, 128  ;;  %s17_s13 = int_to_ptr.vmem [resolvable:$true] %s16_s13 }
   0x2   :  { %p81_p0 = scmp.ne.s32.totalorder %s150_s0, %s80_s16  ;;  %p84_p1 = scmp.lt.u32.totalorder %s80_s16, %s150_s0 }
   0x4   :  { %p86_p2 = pnand %p84_p1, %p81_p0 }
   0x6   :  { %89 = shalt.err (!%p86_p2)
}
   0x7   :  { %s90_s21 = scalar_lea.vmem %s17_s13, 128  ;;  %p95_p4 = scmp.lt.s32.totalorder %s17_s13, %s17_s13 }
   0x8   :  { %p91_p3 = scmp.ne.s32.totalorder %s17_s13, %s90_s21  ;;  %p96_p5 = scmp.lt.s32.totalorder %s90_s21, %s90_s21 }
   0xa   :  { %p97_p6 = por %p96_p5, %p95_p4 }
   0xc   :  { %p98_p7 = pnand %p97_p6, %p91_p3 }
   0xe   :  { %101 = shalt.err (!%p98_p7)
}
   0xf   :  { %19 = dma.hbm_to_vmem [thread:$0]  %s150_s0, 128, %s17_s13, [#allocation5]  }
  0x10   :  { %102 = dma.done.wait [#allocation5], 128  }
  0x11   :  { %103 = vsyncadd [#allocation5], 4294967168  ;;  %vm31_vm0 = vcmask 7168   ;;  %v105_v0 = vmov 0.0   ;;  %v33_v1 = vld [vmem:[#allocation4] sm:$0xff]  ;;  %vm43_vm1 = vcmask 261120   ;;  %v55_v8 = vstv %s152_s2 }
  0x12   :  { %32 = vst.msk [vmem:[#allocation2] sm:$0xff] %vm31_vm0, %v105_v0  ;;  %v73_v2 = vld [vmem:[%s151_s1] ss:$0 sm:$0xff] }
  0x13   :  { %v42_v3 = vmul.f32 %v73_v2, %v33_v1 }
  0x15   :  { %v44_v4 = vsel %vm43_vm1, %v42_v3, 0.0 }
  0x16   :  { %45 = vadd.xlane.f32.xlu0 %v44_v4 }
  0x19   :  { %v35_v5 = vld [vmem:[#allocation2] sm:$0xff] }
  0xa3   :  { %v46_v6 = vpop.xlane.xlu0 %45 }
  0xa4   :  { %v47_v7 = vadd.f32 %v46_v6, %v35_v5 }
  0xa6   :  { %49 = vst.msk [vmem:[#allocation2] sm:$0xff] %vm31_vm0, %v47_v7 }
  0xad   :  { %v53_v9 = vld [vmem:[#allocation2] sm:$0xff] }
  0xae   :  { %v56_v10 = vadd.f32 %v55_v8, %v53_v9 }
  0xb0   :  { %v57_v11 = vand.u32 2147483647, %v56_v10  ;;  %vm61_vm2 = vcmp.ge.f32.partialorder %v56_v10, 0.0 }
  0xb2   :  { %v58_v12 = vsub.f32 0.0, %v57_v11 }
  0xb4   :  { %v59_v13 = vmul.f32 1.442695, %v58_v12 }
  0xb6   :  { %76 = vpow2.f32 %v59_v13 }
  0xc0   :  { %v77_v14 = vpop.eup %76 }
  0xc1   :  { %v62_v15 = vadd.f32 1.0, %v77_v14 }
  0xc3   :  { %78 = vrcp.f32 %v62_v15 }
  0xcd   :  { %v79_v16 = vpop.eup %78 }
  0xce   :  { %v65_v17 = vmul.f32 %v79_v16, %v77_v14 }
  0xd0   :  { %v66_v18 = vsel %vm61_vm2, %v79_v16, %v65_v17 }
  0xd1   :  { %67 = vst.msk [vmem:[%s153_s3] sm:$0xff] %vm31_vm0, %v66_v18 }
  0xd2   :  { %72 = vsyncpa [#allocation5], 1 }

</bundles_post_ra>
